<compile_context>
chip_gen: v7x
topology: tpu7x:2x2x1
jax: 0.10.0
libtpu: 0.0.40
codegen_flags: <defaults>
</compile_context>

<pallas_src>
import jax
import jax.numpy as jnp
from jax.experimental import pallas as pl
from jax.experimental.pallas import tpu as pltpu

HIDDEN = 100   # logical hidden size (matches the PyTorch module)
HP = 128       # lane/sublane-aligned padded hidden size
LANE = 128     # batch now lives on the lane axis -> pad granularity
MAX_TB = 2048  # per-grid-step batch tile cap (VMEM working set stays tiny)


def _round_up(n: int, m: int) -> int:
    return ((n + m - 1) // m) * m


def _cdiv(a: int, b: int) -> int:
    return -(-a // b)


def _tile(B: int):
    """Return (B_pad, TB, n_tiles) with B_pad = TB * n_tiles, TB % 128 == 0."""
    B_pad = _round_up(B, LANE)
    if B_pad <= MAX_TB:
        return B_pad, B_pad, 1            # single tile; pad <= 127 rows
    # Large batch: keep the grid length even so v7x's two TensorCores both
    # get work ("parallel" axis), while TB stays near MAX_TB. Avoids the
    # old up-to-2x round_up(B, TB) padding.
    n_tiles = _round_up(_cdiv(B_pad, MAX_TB), 2)
    TB = _round_up(_cdiv(B_pad, n_tiles), LANE)
    return TB * n_tiles, TB, n_tiles


def mlp_kernel(x_ref, small_ref, w2t_ref, o_ref):
    x = x_ref[...]                     # (1, TB)   batch on the lane axis
    w1 = small_ref[:, 0:1]             # (HP, 1)   fc1 weight column
    b1 = small_ref[:, 1:2]             # (HP, 1)
    b2 = small_ref[:, 2:3]             # (HP, 1)
    w3 = small_ref[:, 3:4]             # (HP, 1)   fc3 weight column
    b3 = small_ref[0:1, 4:5]           # (1, 1)

    # fc1 + ReLU: contraction dim is 1 -> broadcast outer product on the VPU.
    h = jnp.maximum(w1 * x + b1, 0.0)                         # (HP, TB)

    # fc2 + ReLU: the only real matmul; w2 pre-transposed host-side so this
    # is a single lane/sublane-aligned 128-wide MXU dot, f32 accumulate.
    h = jnp.maximum(
        jnp.dot(w2t_ref[...], h, preferred_element_type=jnp.float32) + b2,
        0.0)                                                  # (HP, TB)

    # fc3: output dim is 1 -> weighted sublane reduce; result is already the
    # lane-dense (1, TB) output tile (no masked 1-lane stores).
    o_ref[...] = jnp.sum(h * w3, axis=0, keepdims=True) + b3  # (1, TB)


def net_forward(x, small, w2t):
    """x: (B, 1) f32; small: (HP, 8) packed params; w2t: (HP, HP) = padded fc2^T."""
    B = x.shape[0]
    B_pad, TB, n_tiles = _tile(B)

    xb = x.reshape(1, B)                       # (B,1) -> (1,B): free reshape
    if B_pad != B:
        xb = jnp.pad(xb, ((0, 0), (0, B_pad - B)))

    out = pl.pallas_call(
        mlp_kernel,
        out_shape=jax.ShapeDtypeStruct((1, B_pad), jnp.float32),
        grid=(n_tiles,),
        in_specs=[
            pl.BlockSpec((1, TB), lambda i: (0, i)),     # x: lane-dense batch tile
            pl.BlockSpec((HP, 8), lambda i: (0, 0)),     # packed small params
            pl.BlockSpec((HP, HP), lambda i: (0, 0)),    # fc2 weight (transposed)
        ],
        out_specs=pl.BlockSpec((1, TB), lambda i: (0, i)),   # lane-dense output
        compiler_params=pltpu.CompilerParams(
            dimension_semantics=("parallel",)),          # megacore batch split
    )(xb, small, w2t)

    return out[0, :B].reshape(B, 1)


def init_params(key):
    """Deterministic init mimicking nn.Linear default (uniform +-1/sqrt(fan_in)).

    Weights stored as (in_features, out_features) so y = x @ W + b.
    """
    ks = jax.random.split(key, 6)

    def lin(kw, kb, fan_in, fan_out):
        bound = 1.0 / jnp.sqrt(jnp.float32(fan_in))
        w = jax.random.uniform(kw, (fan_in, fan_out), jnp.float32, -bound, bound)
        b = jax.random.uniform(kb, (1, fan_out), jnp.float32, -bound, bound)
        return w, b

    w1, b1 = lin(ks[0], ks[1], 1, HIDDEN)          # (1, 100), (1, 100)
    w2, b2 = lin(ks[2], ks[3], HIDDEN, HIDDEN)     # (100, 100), (1, 100)
    w3, b3 = lin(ks[4], ks[5], HIDDEN, 1)          # (100, 1), (1, 1)
    return (w1, b1, w2, b2, w3, b3)


def pack_params(params):
    """Zero-pad HIDDEN->HP and pack small operands column-wise into (HP, 8).

    Columns: 0=w1, 1=b1, 2=b2, 3=w3, 4[row 0]=b3.  fc2 is stored transposed
    and padded to (HP, HP).  Zero padding is mathematically inert: padded
    hidden rows stay exactly 0 through ReLU/fc2 and padded w3 entries
    contribute 0 to the final reduce.
    """
    w1, b1, w2, b2, w3, b3 = params
    small = jnp.zeros((HP, 8), jnp.float32)
    small = small.at[:HIDDEN, 0].set(w1[0])
    small = small.at[:HIDDEN, 1].set(b1[0])
    small = small.at[:HIDDEN, 2].set(b2[0])
    small = small.at[:HIDDEN, 3].set(w3[:, 0])
    small = small.at[0, 4].set(b3[0, 0])
    w2t = jnp.zeros((HP, HP), jnp.float32).at[:HIDDEN, :HIDDEN].set(w2.T)
    return small, w2t


def reference_forward(x, params):
    w1, b1, w2, b2, w3, b3 = params
    h = jnp.maximum(x @ w1 + b1, 0.0)
    h = jnp.maximum(h @ w2 + b2, 0.0)
    return h @ w3 + b3


if __name__ == "__main__":
    key = jax.random.PRNGKey(0)
    kx, kp = jax.random.split(key)

    params = init_params(kp)
    small, w2t = pack_params(params)

    # Primary small-shape check (B = 8, matching the module's Linear(1, ...)).
    B = 8
    x = jax.random.normal(kx, (B, 1), jnp.float32)
    out = jax.block_until_ready(net_forward(x, small, w2t))
    ref = reference_forward(x, params)
    assert out.shape == (B, 1)
    assert jnp.allclose(out, ref, atol=1e-4, rtol=1e-4), "mismatch vs reference"

    # Secondary check: batch not a multiple of the 128-lane tile (exercises
    # lane-axis padding + slice-off path).
    B2 = 200
    x2 = jax.random.normal(kx, (B2, 1), jnp.float32)
    out2 = jax.block_until_ready(net_forward(x2, small, w2t))
    ref2 = reference_forward(x2, params)
    assert out2.shape == (B2, 1)
    assert jnp.allclose(out2, ref2, atol=1e-4, rtol=1e-4), "mismatch vs reference"

    print("KERNEL_OK")
</pallas_src>

<mosaic_0001>
module attributes {stable_mosaic.version = 11 : i64} {
  func.func @mlp_kernel(%arg0: i32, %arg1: memref<1x128xf32, #tpu.memory_space<vmem>>, %arg2: memref<128x8xf32, #tpu.memory_space<vmem>>, %arg3: memref<128x128xf32, #tpu.memory_space<vmem>>, %arg4: memref<1x128xf32, #tpu.memory_space<vmem>>) attributes {dimension_semantics = [#tpu.dimension_semantics<parallel>], iteration_bounds = array<i64: 1>, scalar_prefetch = 0 : i64, scratch_operands = 0 : i64, tpu.core_type = #tpu.core_type<tc>, window_params = [{transform_indices = @transform_0, window_bounds = array<i64: 1, 128>}, {pipeline_mode = #tpu.pipeline_mode<synchronous>, transform_indices = @transform_1, window_bounds = array<i64: 128, 8>}, {pipeline_mode = #tpu.pipeline_mode<synchronous>, transform_indices = @transform_2, window_bounds = array<i64: 128, 128>}, {transform_indices = @transform_3, window_bounds = array<i64: 1, 128>}]} {
    %c0 = arith.constant 0 : index
    %c0_0 = arith.constant 0 : index
    %0 = vector.load %arg1[%c0, %c0_0] : memref<1x128xf32, #tpu.memory_space<vmem>>, vector<1x128xf32>
    %c0_1 = arith.constant 0 : index
    %c0_2 = arith.constant 0 : index
    %1 = vector.load %arg2[%c0_1, %c0_2] : memref<128x8xf32, #tpu.memory_space<vmem>>, vector<128x1xf32>
    %c0_3 = arith.constant 0 : index
    %c1 = arith.constant 1 : index
    %2 = vector.load %arg2[%c0_3, %c1] : memref<128x8xf32, #tpu.memory_space<vmem>>, vector<128x1xf32>
    %c0_4 = arith.constant 0 : index
    %c2 = arith.constant 2 : index
    %3 = vector.load %arg2[%c0_4, %c2] : memref<128x8xf32, #tpu.memory_space<vmem>>, vector<128x1xf32>
    %c0_5 = arith.constant 0 : index
    %c3 = arith.constant 3 : index
    %4 = vector.load %arg2[%c0_5, %c3] : memref<128x8xf32, #tpu.memory_space<vmem>>, vector<128x1xf32>
    %c0_6 = arith.constant 0 : index
    %c4 = arith.constant 4 : index
    %5 = vector.load %arg2[%c0_6, %c4] : memref<128x8xf32, #tpu.memory_space<vmem>>, vector<1x1xf32>
    %6 = vector.broadcast %1 : vector<128x1xf32> to vector<128x128xf32>
    %7 = vector.broadcast %0 : vector<1x128xf32> to vector<128x128xf32>
    %8 = arith.mulf %6, %7 : vector<128x128xf32>
    %9 = vector.broadcast %2 : vector<128x1xf32> to vector<128x128xf32>
    %10 = arith.addf %8, %9 : vector<128x128xf32>
    %cst = arith.constant 0.000000e+00 : f32
    %11 = vector.broadcast %cst : f32 to vector<128x128xf32>
    %12 = arith.maximumf %10, %11 : vector<128x128xf32>
    %c0_7 = arith.constant 0 : index
    %c0_8 = arith.constant 0 : index
    %13 = vector.load %arg3[%c0_7, %c0_8] : memref<128x128xf32, #tpu.memory_space<vmem>>, vector<128x128xf32>
    %cst_9 = arith.constant dense<0.000000e+00> : vector<128x128xf32>
    %14 = tpu.matmul %13, %12, %cst_9 {dimension_numbers = #tpu.dot_dimension_numbers<[1], [0], [0], [1], [0, 0, 1, 1], [], []>} : vector<128x128xf32>, vector<128x128xf32>, vector<128x128xf32> -> vector<128x128xf32>
    %15 = vector.broadcast %3 : vector<128x1xf32> to vector<128x128xf32>
    %16 = arith.addf %14, %15 : vector<128x128xf32>
    %cst_10 = arith.constant 0.000000e+00 : f32
    %17 = vector.broadcast %cst_10 : f32 to vector<128x128xf32>
    %18 = arith.maximumf %16, %17 : vector<128x128xf32>
    %19 = vector.broadcast %4 : vector<128x1xf32> to vector<128x128xf32>
    %20 = arith.mulf %18, %19 : vector<128x128xf32>
    %cst_11 = arith.constant dense<0.000000e+00> : vector<128xf32>
    %21 = vector.multi_reduction <add>, %20, %cst_11 [0] : vector<128x128xf32> to vector<128xf32>
    %22 = vector.shape_cast %21 : vector<128xf32> to vector<1x128xf32>
    %23 = vector.broadcast %5 : vector<1x1xf32> to vector<1x128xf32>
    %24 = arith.addf %22, %23 : vector<1x128xf32>
    %c0_12 = arith.constant 0 : index
    %c0_13 = arith.constant 0 : index
    %25 = vector.load %arg4[%c0_12, %c0_13] : memref<1x128xf32, #tpu.memory_space<vmem>>, vector<1x128xf32>
    tpu.vector_store %arg4[%c0_12, %c0_13], %24 {strides = array<i32>} : memref<1x128xf32, #tpu.memory_space<vmem>>, vector<1x128xf32>,
    return
  }
  func.func @transform_0(%arg0: i32) -> (i32, i32) {
    %c0_i32 = arith.constant 0 : i32
    %c0_i32_0 = arith.constant 0 : i32
    return %c0_i32, %arg0 : i32, i32
  }
  func.func @transform_1(%arg0: i32) -> (i32, i32) {
    %c0_i32 = arith.constant 0 : i32
    %c0_i32_0 = arith.constant 0 : i32
    %c0_i32_1 = arith.constant 0 : i32
    return %c0_i32, %c0_i32_0 : i32, i32
  }
  func.func @transform_2(%arg0: i32) -> (i32, i32) {
    %c0_i32 = arith.constant 0 : i32
    %c0_i32_0 = arith.constant 0 : i32
    %c0_i32_1 = arith.constant 0 : i32
    return %c0_i32, %c0_i32_0 : i32, i32
  }
  func.func @transform_3(%arg0: i32) -> (i32, i32) {
    %c0_i32 = arith.constant 0 : i32
    %c0_i32_0 = arith.constant 0 : i32
    return %c0_i32, %arg0 : i32, i32
  }
}

</mosaic_0001>

<bundles_post_ra>
// kernel: tpu_custom_call.1
= control target key start
LH: loop header
LB: loop body
LE: loop exit
PB: predicated region body
PF: predicated region fallthrough
CT: control target
= control target key end

     0   :  { %v787_v2 = vmov 1   ;;  %s1054_s0 = inlined_call_operand.vmem [shape: f32[1,128], index: 0, kind: input, shape index: {}]   ;;  %s1055_s1 = inlined_call_operand.vmem [shape: f32[128,8], index: 1, kind: input, shape index: {}]   ;;  %s1056_s2 = inlined_call_operand.vmem [shape: f32[128,128], index: 2, kind: input, shape index: {}]   ;;  %s1057_s3 = inlined_call_operand.hbm [shape: f32[1,128], index: 3, kind: output, shape index: {}]  }
   0x1   :  { %v816_v0 = vld [vmem:[%s1055_s1 + $0x10] sm:$0xff]  ;;  %v821_v1 = vld [vmem:[%s1055_s1] sm:$0xff]  ;;  %739 = vset.pattern.permute.xlu0 %v787_v2  ;;  %737 = vset.pattern.permute.xlu1 %v787_v2  ;;  %v835_v4 = vld [vmem:[%s1055_s1 + $0x8] sm:$0xff] }
   0x2   :  { %144 = vperm.xlu0 %739, %v816_v0   ;;  %136 = vperm.xlu1 %737, %v821_v1   ;;  %v830_v3 = vld [vmem:[%s1055_s1 + $0x30] sm:$0xff] }
   0x3   :  { %8 = vsyncpa [#allocation3], 0  ;;  %v842_v5 = vld [vmem:[%s1055_s1 + $0x50] sm:$0xff]  ;;  %v847_v6 = vld [vmem:[%s1055_s1 + $0x18] sm:$0xff]  ;;  %v788_v7 = vmov 0   ;;  %v789_v20 = vmov 2  }
   0x4   :  { %v857_v8 = vld [vmem:[%s1055_s1 + $0x20] sm:$0xff]  ;;  %v865_v9 = vld [vmem:[%s1055_s1 + $0x28] sm:$0xff]  ;;  %v880_v11 = vld [vmem:[%s1055_s1 + $0x38] sm:$0xff]  ;;  %v790_v21 = vmov 3  }
   0x5   :  { %v875_v10 = vld [vmem:[%s1055_s1 + $0x48] sm:$0xff]  ;;  %v24_v13 = vld [vmem:[%s1055_s1 + $0x40] sm:$0xff]  ;;  %v899_v14 = vld [vmem:[%s1055_s1 + $0x70] sm:$0xff] }
   0x6   :  { %160 = vperm.xlu0 %739, %v830_v3   ;;  %140 = vperm.xlu1 %737, %v835_v4   ;;  %v890_v12 = vld [vmem:[%s1055_s1 + $0x68] sm:$0xff]  ;;  %v909_v15 = vld [vmem:[%s1055_s1 + $0x58] sm:$0xff]  ;;  %v917_v16 = vld [vmem:[%s1055_s1 + $0x60] sm:$0xff] }
   0x7   :  { %v926_v17 = vld [vmem:[%s1055_s1 + $0x78] sm:$0xff]  ;;  %v231_v18 = vld [vmem:[%s1056_s2] sm:$0xff] }
   0x8   :  { %v239_v19 = vld [vmem:[%s1056_s2 + $0x40] sm:$0xff]  ;;  %659 = vmatprep.mubr.f32.mxu0 %v231_v18 }
   0x9   :  { %671 = vmatprep.mubr.f32.mxu1 %v239_v19  ;;  %v962_v28 = vld [vmem:[%s1054_s0] ss:$0 sm:$0xff] }
   0xa   :  { %176 = vperm.xlu0 %739, %v842_v5   ;;  %738 = vset.pattern.permute.xlu1 %v788_v7 }
   0xb   :  { %50 = vperm.xlu1 %738, %v847_v6  }
   0xe   :  { %748 = vset.pattern.permute.xlu0 %v788_v7 }
   0xf   :  { %35 = vperm.xlu0 %748, %v821_v1   ;;  %740 = vset.pattern.permute.xlu1 %v787_v2 }
  0x10   :  { %148 = vperm.xlu1 %740, %v847_v6  }
  0x13   :  { %40 = vperm.xlu0 %748, %v835_v4  }
  0x14   :  { %741 = vset.pattern.permute.xlu1 %v788_v7 }
  0x15   :  { %55 = vperm.xlu1 %741, %v857_v8  }
  0x17   :  { %45 = vperm.xlu0 %748, %v816_v0  }
  0x19   :  { %742 = vset.pattern.permute.xlu1 %v787_v2 }
  0x1a   :  { %152 = vperm.xlu1 %742, %v857_v8  }
  0x1b   :  { %60 = vperm.xlu0 %748, %v865_v9  }
  0x1e   :  { %156 = vperm.xlu1 %742, %v865_v9  }
  0x1f   :  { %65 = vperm.xlu0 %748, %v830_v3  }
  0x22   :  { %743 = vset.pattern.permute.xlu1 %v788_v7 }
  0x23   :  { %80 = vperm.xlu0 %748, %v875_v10   ;;  %70 = vperm.xlu1 %743, %v880_v11  }
  0x27   :  { %85 = vperm.xlu0 %748, %v842_v5   ;;  %744 = vset.pattern.permute.xlu1 %v787_v2 }
  0x28   :  { %164 = vperm.xlu1 %744, %v880_v11  }
  0x2b   :  { %100 = vperm.xlu0 %748, %v890_v12  }
  0x2c   :  { %745 = vset.pattern.permute.xlu1 %v788_v7 }
  0x2d   :  { %75 = vperm.xlu1 %745, %v24_v13  }
  0x2f   :  { %105 = vperm.xlu0 %748, %v899_v14  }
  0x31   :  { %746 = vset.pattern.permute.xlu1 %v787_v2 }
  0x32   :  { %168 = vperm.xlu1 %746, %v24_v13  }
  0x33   :  { %753 = vset.pattern.permute.xlu0 %v787_v2 }
  0x34   :  { %192 = vperm.xlu0 %753, %v899_v14  }
  0x36   :  { %172 = vperm.xlu1 %746, %v875_v10  }
  0x38   :  { %756 = vset.pattern.permute.xlu0 %v789_v20 }
  0x39   :  { %252 = vperm.xlu0 %756, %v835_v4  }
  0x3a   :  { %747 = vset.pattern.permute.xlu1 %v788_v7 }
  0x3b   :  { %90 = vperm.xlu1 %747, %v909_v15  }
  0x3d   :  { %264 = vperm.xlu0 %756, %v857_v8  }
  0x3f   :  { %749 = vset.pattern.permute.xlu1 %v787_v2 }
  0x40   :  { %180 = vperm.xlu1 %749, %v909_v15  }
  0x41   :  { %758 = vset.pattern.permute.xlu0 %v790_v21 }
  0x42   :  { %477 = vperm.xlu0 %758, %v835_v4  }
  0x44   :  { %750 = vset.pattern.permute.xlu1 %v788_v7 }
  0x45   :  { %95 = vperm.xlu1 %750, %v917_v16  }
  0x46   :  { %485 = vperm.xlu0 %758, %v847_v6  }
  0x49   :  { %751 = vset.pattern.permute.xlu1 %v787_v2 }
  0x4a   :  { %184 = vperm.xlu1 %751, %v917_v16   ;;  %489 = vperm.xlu0 %758, %v857_v8  }
  0x4e   :  { %188 = vperm.xlu1 %751, %v890_v12   ;;  %493 = vperm.xlu0 %758, %v865_v9  }
  0x52   :  { %752 = vset.pattern.permute.xlu1 %v788_v7  ;;  %497 = vperm.xlu0 %758, %v830_v3  }
  0x53   :  { %110 = vperm.xlu1 %752, %v926_v17  }
  0x56   :  { %501 = vperm.xlu0 %758, %v880_v11  }
  0x57   :  { %754 = vset.pattern.permute.xlu1 %v787_v2 }
  0x58   :  { %196 = vperm.xlu1 %754, %v926_v17  }
  0x5a   :  { %505 = vperm.xlu0 %758, %v24_v13  }
  0x5c   :  { %755 = vset.pattern.permute.xlu1 %v789_v20 }
  0x5d   :  { %248 = vperm.xlu1 %755, %v821_v1  }
  0x5e   :  { %509 = vperm.xlu0 %758, %v875_v10  }
  0x61   :  { %256 = vperm.xlu1 %755, %v816_v0  }
  0x62   :  { %513 = vperm.xlu0 %758, %v842_v5  }
  0x65   :  { %260 = vperm.xlu1 %755, %v847_v6  }
  0x66   :  { %517 = vperm.xlu0 %758, %v909_v15  }
  0x69   :  { %757 = vset.pattern.permute.xlu1 %v790_v21 }
  0x6a   :  { %473 = vperm.xlu1 %757, %v821_v1   ;;  %521 = vperm.xlu0 %758, %v917_v16  }
  0x6e   :  { %481 = vperm.xlu1 %757, %v816_v0   ;;  %525 = vperm.xlu0 %758, %v890_v12  }
  0x72   :  { %759 = vset.pattern.permute.xlu1 %v789_v20  ;;  %533 = vperm.xlu0 %758, %v926_v17  }
  0x73   :  { %268 = vperm.xlu1 %759, %v865_v9  }
  0x77   :  { %272 = vperm.xlu1 %759, %v830_v3   ;;  %v791_v3 = vmov 4  }
  0x78   :  { %762 = vset.pattern.permute.xlu0 %v791_v3 }
  0x7b   :  { %276 = vperm.xlu1 %759, %v880_v11  }
  0x7f   :  { %280 = vperm.xlu1 %759, %v24_v13  }
  0x81   :  { %v137_v22 = vpop.permute.xlu1 %136  ;;  %v145_v23 = vpop.permute.xlu0 %144 }
  0x83   :  { %284 = vperm.xlu1 %759, %v875_v10   ;;  %v32_v10 = vld [vmem:[%s1055_s1] sm:$0x1] }
  0x85   :  { %v141_v24 = vpop.permute.xlu1 %140  ;;  %v951_v25 = vpop.permute.xlu0 %160 }
  0x87   :  { %288 = vperm.xlu1 %759, %v842_v5  }
  0x89   :  { %v955_v26 = vpop.permute.xlu0 %176 }
  0x8a   :  { %v51_v27 = vpop.permute.xlu1 %50 }
  0x8b   :  { %v122_v36 = vmul.f32 %v962_v28, %v51_v27  ;;  %292 = vperm.xlu1 %759, %v909_v15  }
  0x8e   :  { %v36_v29 = vpop.permute.xlu0 %35 }
  0x8f   :  { %v119_v30 = vmul.f32 %v962_v28, %v36_v29  ;;  %v149_v31 = vpop.permute.xlu1 %148  ;;  %296 = vperm.xlu1 %759, %v917_v16  }
  0x90   :  { %v202_v40 = vadd.f32 %v149_v31, %v122_v36 }
  0x91   :  { %v199_v33 = vadd.f32 %v137_v22, %v119_v30 }
  0x92   :  { %v41_v32 = vpop.permute.xlu0 %40  ;;  %v218_v48 = vmax.f32 %v202_v40, 0.0 }
  0x93   :  { %v120_v34 = vmul.f32 %v962_v28, %v41_v32  ;;  %v215_v39 = vmax.f32 %v199_v33, 0.0  ;;  %300 = vperm.xlu1 %759, %v890_v12  }
  0x94   :  { %v56_v35 = vpop.permute.xlu1 %55 }
  0x95   :  { %v200_v37 = vadd.f32 %v141_v24, %v120_v34  ;;  %v123_v46 = vmul.f32 %v962_v28, %v56_v35 }
  0x96   :  { %v46_v38 = vpop.permute.xlu0 %45 }
  0x97   :  { %v216_v41 = vmax.f32 %v200_v37, 0.0  ;;  %v121_v42 = vmul.f32 %v962_v28, %v46_v38  ;;  %304 = vperm.xlu1 %759, %v899_v14  }
  0x99   :  { %v683_v43 = vpack.c.bf16 %v216_v41, %v215_v39  ;;  %v201_v44 = vadd.f32 %v145_v23, %v121_v42  ;;  %v153_v45 = vpop.permute.xlu1 %152 }
  0x9a   :  { %v61_v47 = vpop.permute.xlu0 %60  ;;  %v203_v51 = vadd.f32 %v153_v45, %v123_v46 }
  0x9b   :  { %v217_v49 = vmax.f32 %v201_v44, 0.0  ;;  %v124_v50 = vmul.f32 %v962_v28, %v61_v47  ;;  %684 = vmatprep.subr.bf16.mxu0 %v683_v43  ;;  %715 = vmatprep.subr.bf16.mxu1 %v683_v43 }
  0x9c   :  { %686 = vmatpush3.bf16.msra.mxu0 %v683_v43  ;;  %723 = vmatpush3.bf16.msra.mxu1 %v683_v43  ;;  %v219_v55 = vmax.f32 %v203_v51, 0.0  ;;  %v240_v51 = vld [vmem:[%s1056_s2 + $0x48] sm:$0xff] }
  0x9d   :  { %v687_v52 = vpack.c.bf16 %v218_v48, %v217_v49  ;;  %v157_v53 = vpop.permute.xlu1 %156  ;;  %308 = vperm.xlu1 %759, %v926_v17  }
  0x9e   :  { %v204_v54 = vadd.f32 %v157_v53, %v124_v50  ;;  %v66_v57 = vpop.permute.xlu0 %65  ;;  %v232_v50 = vld [vmem:[%s1056_s2 + $0x8] sm:$0xff]  ;;  %v234_v53 = vld [vmem:[%s1056_s2 + $0x18] sm:$0xff] }
  0x9f   :  { %688 = vmatprep.subr.bf16.mxu0 %v687_v52  ;;  %716 = vmatprep.subr.bf16.mxu1 %v687_v52  ;;  %v125_v59 = vmul.f32 %v962_v28, %v66_v57  ;;  %v236_v57 = vld [vmem:[%s1056_s2 + $0x28] sm:$0xff] }
  0xa0   :  { %v220_v56 = vmax.f32 %v204_v54, 0.0  ;;  %690 = vmatpush3.bf16.msra.mxu0 %v687_v52  ;;  %724 = vmatpush3.bf16.msra.mxu1 %v687_v52  ;;  %v241_v52 = vld [vmem:[%s1056_s2 + $0x50] sm:$0xff]  ;;  %v242_v54 = vld [vmem:[%s1056_s2 + $0x58] sm:$0xff] }
  0xa1   :  { %v205_v61 = vadd.f32 %v951_v25, %v125_v59  ;;  %760 = vset.pattern.permute.xlu1 %v790_v21  ;;  %v237_v59 = vld [vmem:[%s1056_s2 + $0x30] sm:$0xff] }
  0xa2   :  { %v691_v58 = vpack.c.bf16 %v220_v56, %v219_v55  ;;  %v71_v60 = vpop.permute.xlu1 %70  ;;  %v81_v6 = vpop.permute.xlu0 %80  ;;  %529 = vperm.xlu1 %760, %v899_v14   ;;  %v235_v55 = vld [vmem:[%s1056_s2 + $0x20] sm:$0xff] }
  0xa3   :  { %v126_v62 = vmul.f32 %v962_v28, %v71_v60  ;;  %v221_v1 = vmax.f32 %v205_v61, 0.0  ;;  %v128_v8 = vmul.f32 %v962_v28, %v81_v6  ;;  %v243_v56 = vld [vmem:[%s1056_s2 + $0x60] sm:$0xff]  ;;  %v245_v60 = vld [vmem:[%s1056_s2 + $0x70] sm:$0xff]  ;;  %v238_v61 = vld [vmem:[%s1056_s2 + $0x38] sm:$0xff] }
  0xa4   :  { %692 = vmatprep.subr.bf16.mxu0 %v691_v58  ;;  %717 = vmatprep.subr.bf16.mxu1 %v691_v58 }
  0xa5   :  { %694 = vmatpush3.bf16.msra.mxu0 %v691_v58  ;;  %725 = vmatpush3.bf16.msra.mxu1 %v691_v58  ;;  %v244_v58 = vld [vmem:[%s1056_s2 + $0x68] sm:$0xff] }
  0xa6   :  { %761 = vset.pattern.permute.xlu1 %v791_v3  ;;  %v86_v15 = vpop.permute.xlu0 %85 }
  0xa7   :  { %v165_v63 = vpop.permute.xlu1 %164  ;;  %575 = vperm.xlu1 %761, %v32_v10   ;;  %v129_v18 = vmul.f32 %v962_v28, %v86_v15 }
  0xa8   :  { %v206_v0 = vadd.f32 %v165_v63, %v126_v62  ;;  %v246_v62 = vld [vmem:[%s1056_s2 + $0x78] sm:$0xff] }
  0xa9   :  { %v209_v20 = vadd.f32 %v955_v26, %v129_v18 }
  0xaa   :  { %v222_v2 = vmax.f32 %v206_v0, 0.0  ;;  %v101_v30 = vpop.permute.xlu0 %100 }
  0xab   :  { %v225_v24 = vmax.f32 %v209_v20, 0.0  ;;  %v132_v33 = vmul.f32 %v962_v28, %v101_v30 }
  0xac   :  { %v695_v4 = vpack.c.bf16 %v222_v2, %v221_v1  ;;  %v76_v5 = vpop.permute.xlu1 %75 }
  0xad   :  { %v127_v9 = vmul.f32 %v962_v28, %v76_v5 }
  0xae   :  { %696 = vmatprep.subr.bf16.mxu0 %v695_v4  ;;  %718 = vmatprep.subr.bf16.mxu1 %v695_v4  ;;  %v106_v26 = vpop.permute.xlu0 %105 }
  0xaf   :  { %698 = vmatpush3.bf16.msra.mxu0 %v695_v4  ;;  %726 = vmatpush3.bf16.msra.mxu1 %v695_v4  ;;  %v133_v39 = vmul.f32 %v962_v28, %v106_v26 }
  0xb1   :  { %v169_v7 = vpop.permute.xlu1 %168 }
  0xb2   :  { %v207_v11 = vadd.f32 %v169_v7, %v127_v9 }
  0xb3   :  { %v193_v42 = vpop.permute.xlu0 %192 }
  0xb4   :  { %v223_v16 = vmax.f32 %v207_v11, 0.0  ;;  %v213_v43 = vadd.f32 %v193_v42, %v133_v39 }
  0xb5   :  { %v173_v12 = vpop.permute.xlu1 %172 }
  0xb6   :  { %v208_v13 = vadd.f32 %v173_v12, %v128_v8  ;;  %v229_v47 = vmax.f32 %v213_v43, 0.0 }
  0xb8   :  { %v224_v17 = vmax.f32 %v208_v13, 0.0  ;;  %v253_v2 = vpop.permute.xlu0 %252 }
  0xba   :  { %v699_v19 = vpack.c.bf16 %v224_v17, %v223_v16  ;;  %v91_v14 = vpop.permute.xlu1 %90 }
  0xbb   :  { %v130_v21 = vmul.f32 %v962_v28, %v91_v14 }
  0xbc   :  { %700 = vmatprep.subr.bf16.mxu0 %v699_v19  ;;  %719 = vmatprep.subr.bf16.mxu1 %v699_v19  ;;  %v265_v4 = vpop.permute.xlu0 %264 }
  0xbd   :  { %702 = vmatpush3.bf16.msra.mxu0 %v699_v19  ;;  %727 = vmatpush3.bf16.msra.mxu1 %v699_v19 }
  0xbf   :  { %v181_v22 = vpop.permute.xlu1 %180 }
  0xc0   :  { %v210_v23 = vadd.f32 %v181_v22, %v130_v21 }
  0xc1   :  { %v478_v6 = vpop.permute.xlu0 %477 }
  0xc2   :  { %v226_v25 = vmax.f32 %v210_v23, 0.0 }
  0xc4   :  { %v703_v27 = vpack.c.bf16 %v226_v25, %v225_v24  ;;  %v96_v29 = vpop.permute.xlu1 %95 }
  0xc5   :  { %v131_v32 = vmul.f32 %v962_v28, %v96_v29  ;;  %v486_v8 = vpop.permute.xlu0 %485 }
  0xc6   :  { %704 = vmatprep.subr.bf16.mxu0 %v703_v27  ;;  %720 = vmatprep.subr.bf16.mxu1 %v703_v27 }
  0xc7   :  { %706 = vmatpush3.bf16.msra.mxu0 %v703_v27  ;;  %728 = vmatpush3.bf16.msra.mxu1 %v703_v27 }
  0xc9   :  { %v185_v31 = vpop.permute.xlu1 %184  ;;  %v490_v10 = vpop.permute.xlu0 %489 }
  0xca   :  { %v211_v34 = vadd.f32 %v185_v31, %v131_v32 }
  0xcc   :  { %v227_v37 = vmax.f32 %v211_v34, 0.0 }
  0xcd   :  { %v189_v35 = vpop.permute.xlu1 %188  ;;  %v494_v12 = vpop.permute.xlu0 %493 }
  0xce   :  { %v212_v36 = vadd.f32 %v189_v35, %v132_v33 }
  0xd0   :  { %v228_v38 = vmax.f32 %v212_v36, 0.0 }
  0xd1   :  { %v498_v15 = vpop.permute.xlu0 %497 }
  0xd2   :  { %v707_v40 = vpack.c.bf16 %v228_v38, %v227_v37  ;;  %v111_v41 = vpop.permute.xlu1 %110 }
  0xd3   :  { %v134_v44 = vmul.f32 %v962_v28, %v111_v41  ;;  %v233_v28 = vld [vmem:[%s1056_s2 + $0x10] sm:$0xff]  ;;  %s792_s2 = smov [#allocation2]  }
  0xd4   :  { %708 = vmatprep.subr.bf16.mxu0 %v707_v40  ;;  %721 = vmatprep.subr.bf16.mxu1 %v707_v40  ;;  %s586_s23 = sshll.u32 %s792_s2, 4  ;;  %s587_s23 = int_to_ptr.vmem [resolvable:$true] %s586_s23 }
  0xd5   :  { %710 = vmatpush3.bf16.msra.mxu0 %v707_v40  ;;  %729 = vmatpush3.bf16.msra.mxu1 %v707_v40  ;;  %v502_v17 = vpop.permute.xlu0 %501  ;;  %s763_s1 = scalar_lea.vmem %s587_s23, 16  ;;  %s767_s24 = scalar_lea.vmem %s587_s23, 32 }
  0xd6   :  { %p764_p0 = scmp.ne.s32.totalorder %s587_s23, %s763_s1  ;;  %p768_p1 = scmp.lt.s32.totalorder %s587_s23, %s587_s23 }
  0xd7   :  { %v197_v45 = vpop.permute.xlu1 %196  ;;  %p769_p2 = scmp.lt.s32.totalorder %s767_s24, %s763_s1 }
  0xd8   :  { %v214_v46 = vadd.f32 %v197_v45, %v134_v44 }
  0xd9   :  { %v506_v19 = vpop.permute.xlu0 %505  ;;  %p770_p3 = por %p769_p2, %p768_p1 }
  0xda   :  { %v230_v48 = vmax.f32 %v214_v46, 0.0 }
  0xdb   :  { %p771_p4 = pnand %p770_p3, %p764_p0 }
  0xdc   :  { %v711_v49 = vpack.c.bf16 %v230_v48, %v229_v47  ;;  %v249_v63 = vpop.permute.xlu1 %248 }
  0xdd   :  { %v510_v27 = vpop.permute.xlu0 %509 }
  0xde   :  { %712 = vmatprep.subr.bf16.mxu0 %v711_v49  ;;  %722 = vmatprep.subr.bf16.mxu1 %v711_v49 }
  0xdf   :  { %714 = vmatpush3.bf16.msra.mxu0 %v711_v49  ;;  %730 = vmatpush3.bf16.msra.mxu1 %v711_v49 }
  0xe0   :  { %v257_v0 = vpop.permute.xlu1 %256 }
  0xe1   :  { %v514_v49 = vpop.permute.xlu0 %513 }
  0xe2   :  { %660 = vmatmul.mubr.f32.vlgmr.msra.gmra.mrb[0].mxu0 %v232_v50  ;;  %672 = vmatmul.mubr.f32.vlgmr.msra.gmra.mrb[0].mxu1 %v240_v51 }
  0xe3   :  { %662 = vmatprep.mubr.f32.mxu0 %v233_v28  ;;  %674 = vmatprep.mubr.f32.mxu1 %v241_v52 }
  0xe4   :  { %v261_v1 = vpop.permute.xlu1 %260 }
  0xe6   :  { %663 = vmatmul.mubr.f32.gmra.mrb[2].mxu0 %v234_v53  ;;  %675 = vmatmul.mubr.f32.gmra.mrb[2].mxu1 %v242_v54 }
  0xe7   :  { %665 = vmatprep.mubr.f32.mxu0 %v235_v55  ;;  %677 = vmatprep.mubr.f32.mxu1 %v243_v56 }
  0xe9   :  { %v474_v3 = vpop.permute.xlu1 %473 }
  0xea   :  { %666 = vmatmul.mubr.f32.gmra.mrb[4].mxu0 %v236_v57  ;;  %678 = vmatmul.mubr.f32.gmra.mrb[4].mxu1 %v244_v58 }
  0xeb   :  { %668 = vmatprep.mubr.f32.mxu0 %v237_v59  ;;  %680 = vmatprep.mubr.f32.mxu1 %v245_v60 }
  0xed   :  { %v482_v5 = vpop.permute.xlu1 %481 }
  0xee   :  { %669 = vmatmul.mubr.f32.gmra.mrb[6].mxu0 %v238_v61  ;;  %681 = vmatmul.mubr.f32.gmra.mrb[6].mxu1 %v246_v62 }
  0xf2   :  { %v269_v7 = vpop.permute.xlu1 %268 }
  0xf6   :  { %v273_v9 = vpop.permute.xlu1 %272 }
  0xfa   :  { %v277_v11 = vpop.permute.xlu1 %276 }
  0xfe   :  { %v281_v13 = vpop.permute.xlu1 %280 }
 0x102   :  { %v285_v16 = vpop.permute.xlu1 %284 }
 0x106   :  { %v289_v18 = vpop.permute.xlu1 %288 }
 0x10a   :  { %v293_v14 = vpop.permute.xlu1 %292 }
 0x10e   :  { %v297_v38 = vpop.permute.xlu1 %296 }
 0x112   :  { %v301_v62 = vpop.permute.xlu1 %300 }
 0x1b5   :  { %v661_v20 = vpop.f32.mrb[0].mxu0  ;;  %v673_v21 = vpop.f32.mrb[0].mxu1 }
 0x1b6   :  { %v383_v22 = vadd.f32 %v661_v20, %v253_v2  ;;  %v377_v23 = vpop.f32.mrb[1].mxu0  ;;  %v417_v24 = vpop.f32.mrb[1].mxu1 }
 0x1b7   :  { %v378_v25 = vadd.f32 %v377_v23, %v249_v63  ;;  %v418_v58 = vadd.f32 %v417_v24, %v281_v13  ;;  %v423_v63 = vadd.f32 %v673_v21, %v285_v16 }
 0x1b8   :  { %v457_v29 = vmax.f32 %v383_v22, 0.0 }
 0x1b9   :  { %v456_v30 = vmax.f32 %v378_v25, 0.0  ;;  %v664_v31 = vpop.f32.mrb[2].mxu0  ;;  %v676_v32 = vpop.f32.mrb[2].mxu1  ;;  %v465_v20 = vmax.f32 %v423_v63, 0.0 }
 0x1ba   :  { %v537_v33 = vmul.f32 %v478_v6, %v457_v29  ;;  %v393_v34 = vadd.f32 %v664_v31, %v261_v1  ;;  %v387_v26 = vpop.f32.mrb[3].mxu0  ;;  %v427_v35 = vpop.f32.mrb[3].mxu1  ;;  %v433_v22 = vadd.f32 %v676_v32, %v293_v14 }
 0x1bb   :  { %v536_v36 = vmul.f32 %v474_v3, %v456_v30  ;;  %v388_v37 = vadd.f32 %v387_v26, %v257_v0  ;;  %v428_v6 = vadd.f32 %v427_v35, %v289_v18  ;;  %v305_v25 = vpop.permute.xlu1 %304  ;;  %v545_v16 = vmul.f32 %v510_v27, %v465_v20 }
 0x1bc   :  { %v459_v40 = vmax.f32 %v393_v34, 0.0 }
 0x1bd   :  { %v552_v39 = vadd.f32 %v537_v33, %v536_v36  ;;  %v458_v41 = vmax.f32 %v388_v37, 0.0  ;;  %v667_v42 = vpop.f32.mrb[4].mxu0  ;;  %v679_v43 = vpop.f32.mrb[4].mxu1 }
 0x1be   :  { %v403_v44 = vadd.f32 %v667_v42, %v269_v7  ;;  %v397_v45 = vpop.f32.mrb[5].mxu0  ;;  %v437_v46 = vpop.f32.mrb[5].mxu1  ;;  %v539_v50 = vmul.f32 %v486_v8, %v459_v40  ;;  %v443_v21 = vadd.f32 %v679_v43, %v301_v62 }
 0x1bf   :  { %v538_v47 = vmul.f32 %v482_v5, %v458_v41  ;;  %v398_v48 = vadd.f32 %v397_v45, %v265_v4  ;;  %v518_v4 = vpop.permute.xlu0 %517  ;;  %v464_v5 = vmax.f32 %v418_v58, 0.0  ;;  %v438_v24 = vadd.f32 %v437_v46, %v297_v38 }
 0x1c0   :  { %v461_v28 = vmax.f32 %v403_v44, 0.0  ;;  %v469_v35 = vmax.f32 %v443_v21, 0.0 }
 0x1c1   :  { %v553_v51 = vadd.f32 %v552_v39, %v538_v47  ;;  %v460_v52 = vmax.f32 %v398_v48, 0.0  ;;  %v670_v53 = vpop.f32.mrb[6].mxu0  ;;  %v682_v54 = vpop.f32.mrb[6].mxu1  ;;  %v544_v13 = vmul.f32 %v506_v19, %v464_v5  ;;  %v468_v33 = vmax.f32 %v438_v24, 0.0 }
 0x1c2   :  { %v413_v55 = vadd.f32 %v670_v53, %v277_v11  ;;  %v407_v56 = vpop.f32.mrb[7].mxu0  ;;  %v447_v57 = vpop.f32.mrb[7].mxu1  ;;  %v541_v0 = vmul.f32 %v494_v12, %v461_v28  ;;  %v467_v12 = vmax.f32 %v433_v22, 0.0 }
 0x1c3   :  { %v540_v59 = vmul.f32 %v490_v10, %v460_v52  ;;  %v554_v60 = vadd.f32 %v553_v51, %v539_v50  ;;  %v408_v61 = vadd.f32 %v407_v56, %v273_v9  ;;  %v466_v10 = vmax.f32 %v428_v6, 0.0  ;;  %v522_v29 = vpop.permute.xlu0 %521 }
 0x1c4   :  { %v463_v2 = vmax.f32 %v413_v55, 0.0  ;;  %v448_v18 = vadd.f32 %v447_v57, %v305_v25  ;;  %v547_v26 = vmul.f32 %v518_v4, %v467_v12  ;;  %v548_v36 = vmul.f32 %v522_v29, %v468_v33 }
 0x1c5   :  { %v555_v1 = vadd.f32 %v554_v60, %v540_v59  ;;  %v462_v3 = vmax.f32 %v408_v61, 0.0  ;;  %v546_v31 = vmul.f32 %v514_v49, %v466_v10 }
 0x1c6   :  { %v543_v11 = vmul.f32 %v502_v17, %v463_v2  ;;  %v470_v19 = vmax.f32 %v448_v18, 0.0 }
 0x1c7   :  { %v542_v7 = vmul.f32 %v498_v15, %v462_v3  ;;  %v556_v8 = vadd.f32 %v555_v1, %v541_v0  ;;  %v309_v15 = vpop.permute.xlu1 %308  ;;  %v526_v32 = vpop.permute.xlu0 %525 }
 0x1c8   :  { %v453_v14 = vadd.f32 %v682_v54, %v309_v15  ;;  %v549_v39 = vmul.f32 %v526_v32, %v469_v35 }
 0x1c9   :  { %v557_v23 = vadd.f32 %v556_v8, %v542_v7 }
 0x1ca   :  { %v471_v40 = vmax.f32 %v453_v14, 0.0 }
 0x1cb   :  { %v558_v9 = vadd.f32 %v557_v23, %v543_v11  ;;  %v530_v38 = vpop.permute.xlu1 %529  ;;  %v534_v43 = vpop.permute.xlu0 %533 }
 0x1cc   :  { %v550_v41 = vmul.f32 %v530_v38, %v470_v19  ;;  %v551_v44 = vmul.f32 %v534_v43, %v471_v40 }
 0x1cd   :  { %v559_v30 = vadd.f32 %v558_v9, %v544_v13 }
 0x1cf   :  { %v560_v34 = vadd.f32 %v559_v30, %v545_v16  ;;  %v576_v28 = vpop.permute.xlu1 %575 }
 0x1d1   :  { %v561_v17 = vadd.f32 %v560_v34, %v546_v31 }
 0x1d3   :  { %v562_v37 = vadd.f32 %v561_v17, %v547_v26 }
 0x1d5   :  { %v563_v27 = vadd.f32 %v562_v37, %v548_v36 }
 0x1d7   :  { %v564_v42 = vadd.f32 %v563_v27, %v549_v39 }
 0x1d9   :  { %v565_v45 = vadd.f32 %v564_v42, %v550_v41 }
 0x1db   :  { %v566_v46 = vadd.f32 %v565_v45, %v551_v44 }
 0x1dd   :  { %v567_v47 = vrot.slane %v566_v46, 4 }
 0x1df   :  { %v568_v48 = vadd.f32 %v567_v47, %v566_v46 }
 0x1e1   :  { %v569_v49 = vrot.slane %v568_v48, 2 }
 0x1e3   :  { %v570_v50 = vadd.f32 %v569_v49, %v568_v48 }
 0x1e5   :  { %v571_v51 = vrot.slane %v570_v50, 1 }
 0x1e7   :  { %v572_v52 = vadd.f32 %v571_v51, %v570_v50 }
 0x1e9   :  { %v578_v53 = vadd.f32 %v576_v28, %v572_v52 }
 0x1eb   :  { %579 = vst [vmem:[#allocation2] sm:$0x1] %v578_v53 }
 0x1ec   :  { %774 = shalt.err (!%p771_p4)
}
 0x1ed   :  { %s775_s27 = scalar_lea.hbm %s1057_s3, 16 }
 0x1ee   :  { %p776_p5 = scmp.ne.s32.totalorder %s1057_s3, %s775_s27  ;;  %p779_p6 = scmp.lt.u32.totalorder %s775_s27, %s1057_s3 }
 0x1f0   :  { %p781_p7 = pnand %p779_p6, %p776_p5 }
 0x1f2   :  { %784 = shalt.err (!%p781_p7)
}
 0x1f3   :  { %589 = dma.vmem_to_hbm [thread:$0]  %s587_s23, 16, %s1057_s3, [#allocation3]  }
 0x1f4   :  { %785 = dma.done.wait [#allocation3], 16  }
 0x1f5   :  { %786 = vsyncadd [#allocation3], 4294967280 }
 0x1f6   :  { %593 = vsyncpa [#allocation3], 1 }

</bundles_post_ra>
